<compile_context>
chip_gen: v7x
topology: tpu7x:2x2x1
jax: 0.10.0
libtpu: 0.0.40
codegen_flags: <defaults>
</compile_context>

<pallas_src>
import jax
import jax.numpy as jnp
from jax import lax
from jax.experimental import pallas as pl
from jax.experimental.pallas import tpu as pltpu

CLAMP = 1e-7            # clamp_value for depth / gradient / consensus losses
HUBER_SIGMA2 = 9.0      # HuberLoss(sigma=3) -> sigma ** 2
DOOB_BETA = 4.0
DOOB_GAMMA = 0.5        # -> sqrt(1 - pt)
NORMALIZE_EPS = 1e-12   # F.normalize default eps


# --------------------------- in-kernel helpers ---------------------------
def _stats_tile(stats):
    """Scatter a short list of scalars into row 0 of a lane-dense (1,8,128) tile."""
    row = lax.broadcasted_iota(jnp.int32, (8, 128), 0)
    col = lax.broadcasted_iota(jnp.int32, (8, 128), 1)
    row0 = row == 0
    tile = jnp.zeros((8, 128), jnp.float32)
    for idx, v in enumerate(stats):
        tile = jnp.where(row0 & (col == idx), v.astype(jnp.float32), tile)
    return tile[None, :, :]


def _window_views(xp, H, W):
    """Nine static (H, W) views of a border-padded (H+2, W+2) image.

    views[(di, dj)][i, j] == x[i + di, j + dj] (zero / border value outside)."""
    return {
        (-1, -1): xp[0:H, 0:W],
        (-1, 0):  xp[0:H, 1:W + 1],
        (-1, 1):  xp[0:H, 2:W + 2],
        (0, -1):  xp[1:H + 1, 0:W],
        (0, 0):   xp[1:H + 1, 1:W + 1],
        (0, 1):   xp[1:H + 1, 2:W + 2],
        (1, -1):  xp[2:H + 2, 0:W],
        (1, 0):   xp[2:H + 2, 1:W + 1],
        (1, 1):   xp[2:H + 2, 2:W + 2],
    }


def _sobel(nb):
    """F.conv2d(x, sobel_{x,y}/8, padding=1) from precomputed neighbor views."""
    gx = (nb[(-1, -1)] - nb[(-1, 1)]
          + 2.0 * (nb[(0, -1)] - nb[(0, 1)])
          + nb[(1, -1)] - nb[(1, 1)]) * 0.125
    gy = (nb[(-1, -1)] + 2.0 * nb[(-1, 0)] + nb[(-1, 1)]
          - nb[(1, -1)] - 2.0 * nb[(1, 0)] - nb[(1, 1)]) * 0.125
    return gx, gy


def _laplacian(nb):
    return (nb[(-1, 0)] + nb[(1, 0)] + nb[(0, -1)] + nb[(0, 1)]
            - 4.0 * nb[(0, 0)]) * 0.125


# ------------------------------- kernels --------------------------------
def _depth_stats_kernel(dp1_ref, dg1_ref, m_ref, stats_ref, nabs_ref):
    """BerHu pass 1 + SpatialGradientsLoss (smooth + Huber) per-image sums."""
    m = m_ref[0]                                   # (H, W)
    H, W = m.shape
    # inputs were padded with 1.0 -> log(clamp(1.0)) == 0 at the border,
    # i.e. exactly F.conv2d's zero padding of the log images.
    lpp = jnp.log(jnp.maximum(dp1_ref[0], CLAMP))  # (H+2, W+2)
    lgp = jnp.log(jnp.maximum(dg1_ref[0], CLAMP))

    nb_p = _window_views(lpp, H, W)
    nb_g = _window_views(lgp, H, W)

    # LainaBerHuLoss first pass: masked |log p - log t|, its max, mask sum.
    n_abs = jnp.abs(nb_p[(0, 0)] - nb_g[(0, 0)]) * m
    mask_sum = jnp.sum(m)
    max_n = jnp.max(n_abs)

    # Sobel of the two log images; diff gradients via conv linearity.
    gx_p, gy_p = _sobel(nb_p)
    gx_g, gy_g = _sobel(nb_g)
    gxd = gx_p - gx_g
    gyd = gy_p - gy_g
    smooth_sum = jnp.sum(m * (gxd * gxd + gyd * gyd))

    gi = gx_p * gx_p + gy_p * gy_p
    gt = gx_g * gx_g + gy_g * gy_g
    nh = jnp.abs(gi - gt) * m
    hub = jnp.where(nh < 1.0 / HUBER_SIGMA2,
                    0.5 * HUBER_SIGMA2 * nh * nh,
                    nh - 0.5 / HUBER_SIGMA2)
    huber_sum = jnp.sum(hub)

    stats_ref[...] = _stats_tile([mask_sum, max_n, smooth_sum, huber_sum])
    nabs_ref[...] = n_abs[None, :, :]


def _berhu_kernel(c_ref, nabs_ref, out_ref):
    """BerHu pass 2: needs the data-dependent global threshold c."""
    c = jnp.sum(c_ref[...])                        # (1, 1) block -> scalar
    n = nabs_ref[0]
    berhu = jnp.where(n < c, n, (n * n + c * c) / (2.0 * c + 1e-9))
    out_ref[...] = _stats_tile([jnp.sum(berhu)])


def _normals_geo_kernel(np_ref, ng_ref, dp0_ref, bp_ref, m_ref, out_ref):
    """normals_loss numerator + both geometric-consensus per-image sums."""
    m = m_ref[0]
    H, W = m.shape
    bp = bp_ref[0]

    np0 = np_ref[0, 0]
    np1 = np_ref[0, 1]
    np2 = np_ref[0, 2]
    ng0 = ng_ref[0, 0]
    ng1 = ng_ref[0, 1]
    ng2 = ng_ref[0, 2]
    prod_sum = jnp.sum(m * (np0 * ng0 + np1 * ng1 + np2 * ng2))

    nb = _window_views(dp0_ref[0], H, W)           # raw depth, zero padded
    gx, gy = _sobel(nb)
    lap = _laplacian(nb)
    g = gx * gx + gy * gy

    # DepthBoundaryConsensusLoss per-pixel term (divide by numel in wrapper)
    bc = jnp.clip(bp, CLAMP, 1.0 - CLAMP)
    db = (jnp.abs(g * jnp.log(bc) * lap)
          + 1e-4 * jnp.abs(jnp.log(1.0 - bc) * jnp.exp(-lap))
          + 1e-4 * jnp.abs(bc))
    db_sum = jnp.sum(db)

    # NormalDepthConsensusLoss per-pixel term (mean taken in wrapper)
    gd = jnp.maximum(jnp.sqrt(g), NORMALIZE_EPS)
    gnx = gx / gd
    gny = gy / gd
    nd = jnp.maximum(jnp.sqrt(np0 * np0 + np1 * np1), NORMALIZE_EPS)
    pr = gnx * (np0 / nd) + gny * (np1 / nd)
    pr = jnp.maximum(1.0 - pr, 0.0)
    pr = jnp.abs(pr * (-jnp.log(jnp.maximum(bp, CLAMP))))
    ndb_sum = jnp.sum(pr)

    out_ref[...] = _stats_tile([prod_sum, db_sum, ndb_sum])


def _doobnet_kernel(bp_ref, bg_ref, out_ref):
    """DoobNet focal boundary loss: alpha-independent partial sums."""
    bp = bp_ref[0]
    bg = bg_ref[0]
    pt = jnp.clip(bg * bp + (1.0 - bg) * (1.0 - bp), CLAMP, 1.0 - CLAMP)
    powpt = jnp.sqrt(1.0 - pt) * DOOB_BETA * jnp.log(pt)   # (1-pt)^0.5 * beta * log pt
    s_bg = jnp.sum(bg)
    s_base = jnp.sum((1.0 - bg) * powpt)                    # alfa = (1-bg) + alpha*(2bg-1)
    s_alpha = jnp.sum((2.0 * bg - 1.0) * powpt)
    out_ref[...] = _stats_tile([s_bg, s_base, s_alpha])


# ------------------------------- wrapper ---------------------------------
def _per_image_spec(H, W):
    return pl.BlockSpec((1, H, W), lambda b: (b, 0, 0))


def sharpnet_loss(mask_gt, d_pred, d_gt, n_pred, n_gt, b_pred, b_gt,
                  use_grad=True):
    """JAX/Pallas equivalent of SharpNetLoss.forward with every branch enabled.

    Returns (d_loss, grad_loss, n_loss, b_loss, geo_loss)."""
    if mask_gt.ndim != 4:
        mask_gt = mask_gt[:, None]
    mask = mask_gt[:, 0].astype(jnp.float32)       # (B, H, W) = mask_gt_valid
    dp = d_pred[:, 0].astype(jnp.float32)          # (B, H, W)
    dg = d_gt.astype(jnp.float32)
    if dg.ndim == 4:
        dg = dg[:, 0]
    n_p = n_pred.astype(jnp.float32)               # (B, 3, H, W)
    n_g = n_gt.astype(jnp.float32)
    bp = b_pred[:, 0].astype(jnp.float32)          # (B, H, W)
    bg = b_gt[:, 0].astype(jnp.float32)

    B, H, W = dp.shape
    params = pltpu.CompilerParams(dimension_semantics=("parallel",))
    stats_spec = pl.BlockSpec((1, 8, 128), lambda b: (b, 0, 0))
    stats_shape = jax.ShapeDtypeStruct((B, 8, 128), jnp.float32)

    # Layout plumbing (wrapper-side): pad so every conv tap is a static window.
    dp1 = jnp.pad(dp, ((0, 0), (1, 1), (1, 1)), constant_values=1.0)
    dg1 = jnp.pad(dg, ((0, 0), (1, 1), (1, 1)), constant_values=1.0)
    dp0 = jnp.pad(dp, ((0, 0), (1, 1), (1, 1)), constant_values=0.0)
    padded_spec = pl.BlockSpec((1, H + 2, W + 2), lambda b: (b, 0, 0))

    # ---- kernel A: BerHu pass 1 + spatial-gradient (smooth + Huber) sums ----
    stats_a, n_abs = pl.pallas_call(
        _depth_stats_kernel,
        out_shape=(stats_shape, jax.ShapeDtypeStruct((B, H, W), jnp.float32)),
        grid=(B,),
        in_specs=[padded_spec, padded_spec, _per_image_spec(H, W)],
        out_specs=(stats_spec, _per_image_spec(H, W)),
        compiler_params=params,
    )(dp1, dg1, mask)

    mask_sum = jnp.sum(stats_a[:, 0, 0])
    c = 0.2 * jnp.max(stats_a[:, 0, 1])
    smooth_total = jnp.sum(stats_a[:, 0, 2])
    huber_total = jnp.sum(stats_a[:, 0, 3])

    # ---- kernel B: BerHu pass 2 (global threshold c) ----
    stats_b = pl.pallas_call(
        _berhu_kernel,
        out_shape=stats_shape,
        grid=(B,),
        in_specs=[pl.BlockSpec((1, 1), lambda b: (0, 0)),
                  _per_image_spec(H, W)],
        out_specs=stats_spec,
        compiler_params=params,
    )(jnp.reshape(c, (1, 1)).astype(jnp.float32), n_abs)
    berhu_total = jnp.sum(stats_b[:, 0, 0])

    # ---- kernel C: normals loss + geometric-consensus terms ----
    stats_c = pl.pallas_call(
        _normals_geo_kernel,
        out_shape=stats_shape,
        grid=(B,),
        in_specs=[pl.BlockSpec((1, 3, H, W), lambda b: (b, 0, 0, 0)),
                  pl.BlockSpec((1, 3, H, W), lambda b: (b, 0, 0, 0)),
                  padded_spec,
                  _per_image_spec(H, W),
                  _per_image_spec(H, W)],
        out_specs=stats_spec,
        compiler_params=params,
    )(n_p, n_g, dp0, bp, mask)
    prod_total = jnp.sum(stats_c[:, 0, 0])
    db_total = jnp.sum(stats_c[:, 0, 1])
    ndb_total = jnp.sum(stats_c[:, 0, 2])

    # ---- kernel D: DoobNet boundary loss partial sums ----
    stats_d = pl.pallas_call(
        _doobnet_kernel,
        out_shape=stats_shape,
        grid=(B,),
        in_specs=[_per_image_spec(H, W), _per_image_spec(H, W)],
        out_specs=stats_spec,
        compiler_params=params,
    )(bp, bg)
    s_bg = jnp.sum(stats_d[:, 0, 0])
    s_base = jnp.sum(stats_d[:, 0, 1])
    s_alpha = jnp.sum(stats_d[:, 0, 2])

    # ---- scalar combines (exactly the torch reductions) ----
    numel = float(B * H * W)

    d_loss = berhu_total / mask_sum                                  # LainaBerHuLoss
    if use_grad:
        # factor 3 on the smooth term comes from mask.repeat(1, 3, 1, 1)
        # broadcasting against the (B,1,H,W) gradient image in the torch code.
        grad_loss = (3.0 * smooth_total + huber_total) / mask_sum    # SpatialGradientsLoss
    else:
        grad_loss = jnp.float32(0.0)
    n_loss = jnp.maximum(1.0 - prod_total / mask_sum, 0.0)           # normals_loss

    alpha = 1.0 - s_bg / numel                                       # DoobNetLoss
    b_loss = 0.01 * (-(s_base + alpha * s_alpha) / B)

    geo_loss = (db_total + ndb_total) / numel                        # consensus losses

    return d_loss, grad_loss, n_loss, b_loss, geo_loss


# -------------------- pure-JAX reference (mirrors torch) --------------------
def _conv3x3(x, w):
    k = (w * 0.125).reshape(1, 1, 3, 3).astype(jnp.float32)
    return lax.conv_general_dilated(
        x, k, window_strides=(1, 1), padding=((1, 1), (1, 1)),
        dimension_numbers=("NCHW", "OIHW", "NCHW"),
        precision=lax.Precision.HIGHEST)


def _sobel_kernels():
    sx = jnp.array([[1., 0., -1.], [2., 0., -2.], [1., 0., -1.]], jnp.float32)
    sy = jnp.array([[1., 2., 1.], [0., 0., 0.], [-1., -2., -1.]], jnp.float32)
    return sx, sy


def _ref_berhu(inp, tgt, mask):
    n = jnp.abs(jnp.log(jnp.maximum(inp, CLAMP)) - jnp.log(jnp.maximum(tgt, CLAMP)))
    n = (n * mask)[:, 0]
    c = 0.2 * jnp.max(n)
    loss = jnp.where(n < c, n, (n ** 2 + c ** 2) / (2.0 * c + 1e-9))
    return jnp.sum(loss) / jnp.sum(mask)


def _ref_spatial_gradients(inp, tgt, mask):
    sx, sy = _sobel_kernels()
    li = jnp.log(jnp.maximum(inp, CLAMP))
    lt = jnp.log(jnp.maximum(tgt, CLAMP))
    diff = li - lt
    grad_diff = _conv3x3(diff, sx) ** 2 + _conv3x3(diff, sy) ** 2
    smooth = jnp.sum(grad_diff * jnp.tile(mask, (1, 3, 1, 1))) / jnp.sum(mask)
    gi = _conv3x3(li, sx) ** 2 + _conv3x3(li, sy) ** 2
    gt = _conv3x3(lt, sx) ** 2 + _conv3x3(lt, sy) ** 2
    n = jnp.abs(gi - gt) * mask
    hub = jnp.where(n < 1.0 / 9.0, 0.5 * (3.0 * n) ** 2, n - 0.5 / 9.0)
    return smooth + jnp.sum(hub) / jnp.sum(mask)


def _ref_normals_loss(n_pred, n_gt, mask):
    prod = n_pred * n_gt * mask
    return jnp.maximum(1.0 - jnp.sum(prod) / jnp.sum(mask), 0.0)


def _ref_doobnet(b_pred, b_gt):
    N = b_gt.shape[0]
    bp = b_pred.reshape(-1)
    bg = b_gt.reshape(-1).astype(jnp.float32)
    alpha = 1.0 - jnp.sum(bg) / bg.shape[0]
    alfa = alpha * bg + (1.0 - alpha) * (1.0 - bg)
    pt = jnp.clip(bg * bp + (1.0 - bg) * (1.0 - bp), 1e-7, 1.0 - 1e-7)
    power_pt = (1.0 - pt) ** 0.5 * 4.0 * jnp.log(pt)
    return jnp.sum(-alfa * power_pt) / N


def _ref_depth_boundary_consensus(depth, boundary):
    sx, sy = _sobel_kernels()
    lap_k = jnp.array([[0., 1., 0.], [1., -4., 1.], [0., 1., 0.]], jnp.float32)
    lap_d = _conv3x3(depth, lap_k)
    g = _conv3x3(depth, sx) ** 2 + _conv3x3(depth, sy) ** 2
    bc = jnp.clip(boundary, 1e-7, 1.0 - 1e-7)
    loss = (jnp.abs(g * jnp.log(bc) * lap_d)
            + 1e-4 * jnp.abs(jnp.log(1.0 - bc) * jnp.exp(-lap_d))
            + 1e-4 * jnp.abs(bc))
    return jnp.sum(loss) / depth.size


def _ref_normal_depth_consensus(normals, depth, boundary):
    sx, sy = _sobel_kernels()
    g = jnp.concatenate([_conv3x3(depth, sx), _conv3x3(depth, sy)], axis=1)
    g = g / jnp.maximum(jnp.linalg.norm(g, axis=1, keepdims=True), NORMALIZE_EPS)
    n2 = normals[:, :2]
    n2 = n2 / jnp.maximum(jnp.linalg.norm(n2, axis=1, keepdims=True), NORMALIZE_EPS)
    prod = jnp.sum(g * n2, axis=1, keepdims=True)
    prod = jnp.maximum(1.0 - prod, 0.0)
    prod = jnp.abs(prod * (-jnp.log(jnp.maximum(boundary, 1e-7))))
    return jnp.mean(prod)


def _ref_sharpnet_loss(mask_gt, d_pred, d_gt, n_pred, n_gt, b_pred, b_gt,
                       use_grad=True):
    if mask_gt.ndim != 4:
        mask_gt = mask_gt[:, None]
    mask = mask_gt[:, 0:1].astype(jnp.float32)
    d_pred = d_pred.astype(jnp.float32)
    d_gt = d_gt.astype(jnp.float32)
    if d_gt.ndim != 4:
        d_gt = d_gt[:, None]
    n_pred = n_pred.astype(jnp.float32)
    n_gt = n_gt.astype(jnp.float32)
    b_pred = b_pred.astype(jnp.float32)
    b_gt = b_gt.astype(jnp.float32)

    d_loss = _ref_berhu(d_pred, d_gt, mask)
    grad_loss = (_ref_spatial_gradients(d_pred, d_gt, mask)
                 if use_grad else jnp.float32(0.0))
    n_loss = _ref_normals_loss(n_pred, n_gt, mask)
    b_loss = 0.01 * _ref_doobnet(b_pred, b_gt)
    geo_loss = (_ref_depth_boundary_consensus(d_pred, b_pred)
                + _ref_normal_depth_consensus(n_pred, d_pred, b_pred))
    return d_loss, grad_loss, n_loss, b_loss, geo_loss


if __name__ == "__main__":
    key = jax.random.PRNGKey(0)
    ks = jax.random.split(key, 7)
    B, H, W = 2, 16, 16

    d_pred = jax.random.uniform(ks[0], (B, 1, H, W), jnp.float32, 0.2, 3.0)
    d_gt = jax.random.uniform(ks[1], (B, H, W), jnp.float32, 0.2, 3.0)
    mask_gt = (jax.random.uniform(ks[2], (B, H, W)) > 0.3).astype(jnp.float32)
    n_pred = jax.random.normal(ks[3], (B, 3, H, W), jnp.float32)
    n_gt = jax.random.normal(ks[4], (B, 3, H, W), jnp.float32)
    b_pred = jax.random.uniform(ks[5], (B, 1, H, W), jnp.float32, 0.02, 0.98)
    b_gt = (jax.random.uniform(ks[6], (B, 1, H, W)) > 0.7).astype(jnp.float32)

    out = sharpnet_loss(mask_gt, d_pred, d_gt, n_pred, n_gt, b_pred, b_gt,
                        use_grad=True)
    out = jax.block_until_ready(out)

    ref = _ref_sharpnet_loss(mask_gt, d_pred, d_gt, n_pred, n_gt, b_pred, b_gt,
                             use_grad=True)
    names = ("d_loss", "grad_loss", "n_loss", "b_loss", "geo_loss")
    for name, o, r in zip(names, out, ref):
        assert jnp.allclose(o, r, rtol=5e-3, atol=1e-4), (name, float(o), float(r))
    print("KERNEL_OK")
</pallas_src>

<mosaic_0001>
module attributes {stable_mosaic.version = 11 : i64} {
  func.func @_depth_stats_kernel(%arg0: i32, %arg1: memref<1x18x18xf32, #tpu.memory_space<vmem>>, %arg2: memref<1x18x18xf32, #tpu.memory_space<vmem>>, %arg3: memref<1x16x16xf32, #tpu.memory_space<vmem>>, %arg4: memref<1x8x128xf32, #tpu.memory_space<vmem>>, %arg5: memref<1x16x16xf32, #tpu.memory_space<vmem>>) attributes {dimension_semantics = [#tpu.dimension_semantics<parallel>], iteration_bounds = array<i64: 2>, scalar_prefetch = 0 : i64, scratch_operands = 0 : i64, tpu.core_type = #tpu.core_type<tc>, window_params = [{transform_indices = @transform_0, window_bounds = array<i64: 1, 18, 18>}, {transform_indices = @transform_1, window_bounds = array<i64: 1, 18, 18>}, {transform_indices = @transform_2, window_bounds = array<i64: 1, 16, 16>}, {transform_indices = @transform_3, window_bounds = array<i64: 1, 8, 128>}, {transform_indices = @transform_4, window_bounds = array<i64: 1, 16, 16>}]} {
    %c0 = arith.constant 0 : index
    %c0_0 = arith.constant 0 : index
    %c0_1 = arith.constant 0 : index
    %0 = vector.load %arg3[%c0, %c0_0, %c0_1] : memref<1x16x16xf32, #tpu.memory_space<vmem>>, vector<1x16x16xf32>
    %1 = vector.shape_cast %0 : vector<1x16x16xf32> to vector<16x16xf32>
    %c0_2 = arith.constant 0 : index
    %c0_3 = arith.constant 0 : index
    %c0_4 = arith.constant 0 : index
    %2 = vector.load %arg1[%c0_2, %c0_3, %c0_4] : memref<1x18x18xf32, #tpu.memory_space<vmem>>, vector<1x18x18xf32>
    %3 = vector.shape_cast %2 : vector<1x18x18xf32> to vector<18x18xf32>
    %cst = arith.constant 1.000000e-07 : f32
    %4 = vector.broadcast %cst : f32 to vector<18x18xf32>
    %5 = arith.maximumf %3, %4 : vector<18x18xf32>
    %6 = math.log %5 : vector<18x18xf32>
    %c0_5 = arith.constant 0 : index
    %c0_6 = arith.constant 0 : index
    %c0_7 = arith.constant 0 : index
    %7 = vector.load %arg2[%c0_5, %c0_6, %c0_7] : memref<1x18x18xf32, #tpu.memory_space<vmem>>, vector<1x18x18xf32>
    %8 = vector.shape_cast %7 : vector<1x18x18xf32> to vector<18x18xf32>
    %cst_8 = arith.constant 1.000000e-07 : f32
    %9 = vector.broadcast %cst_8 : f32 to vector<18x18xf32>
    %10 = arith.maximumf %8, %9 : vector<18x18xf32>
    %11 = math.log %10 : vector<18x18xf32>
    %12 = vector.extract_strided_slice %6 {offsets = [0, 0], sizes = [16, 16], strides = [1, 1]} : vector<18x18xf32> to vector<16x16xf32>
    %13 = vector.extract_strided_slice %6 {offsets = [0, 1], sizes = [16, 16], strides = [1, 1]} : vector<18x18xf32> to vector<16x16xf32>
    %14 = vector.extract_strided_slice %6 {offsets = [0, 2], sizes = [16, 16], strides = [1, 1]} : vector<18x18xf32> to vector<16x16xf32>
    %15 = vector.extract_strided_slice %6 {offsets = [1, 0], sizes = [16, 16], strides = [1, 1]} : vector<18x18xf32> to vector<16x16xf32>
    %16 = vector.extract_strided_slice %6 {offsets = [1, 1], sizes = [16, 16], strides = [1, 1]} : vector<18x18xf32> to vector<16x16xf32>
    %17 = vector.extract_strided_slice %6 {offsets = [1, 2], sizes = [16, 16], strides = [1, 1]} : vector<18x18xf32> to vector<16x16xf32>
    %18 = vector.extract_strided_slice %6 {offsets = [2, 0], sizes = [16, 16], strides = [1, 1]} : vector<18x18xf32> to vector<16x16xf32>
    %19 = vector.extract_strided_slice %6 {offsets = [2, 1], sizes = [16, 16], strides = [1, 1]} : vector<18x18xf32> to vector<16x16xf32>
    %20 = vector.extract_strided_slice %6 {offsets = [2, 2], sizes = [16, 16], strides = [1, 1]} : vector<18x18xf32> to vector<16x16xf32>
    %21 = vector.extract_strided_slice %11 {offsets = [0, 0], sizes = [16, 16], strides = [1, 1]} : vector<18x18xf32> to vector<16x16xf32>
    %22 = vector.extract_strided_slice %11 {offsets = [0, 1], sizes = [16, 16], strides = [1, 1]} : vector<18x18xf32> to vector<16x16xf32>
    %23 = vector.extract_strided_slice %11 {offsets = [0, 2], sizes = [16, 16], strides = [1, 1]} : vector<18x18xf32> to vector<16x16xf32>
    %24 = vector.extract_strided_slice %11 {offsets = [1, 0], sizes = [16, 16], strides = [1, 1]} : vector<18x18xf32> to vector<16x16xf32>
    %25 = vector.extract_strided_slice %11 {offsets = [1, 1], sizes = [16, 16], strides = [1, 1]} : vector<18x18xf32> to vector<16x16xf32>
    %26 = vector.extract_strided_slice %11 {offsets = [1, 2], sizes = [16, 16], strides = [1, 1]} : vector<18x18xf32> to vector<16x16xf32>
    %27 = vector.extract_strided_slice %11 {offsets = [2, 0], sizes = [16, 16], strides = [1, 1]} : vector<18x18xf32> to vector<16x16xf32>
    %28 = vector.extract_strided_slice %11 {offsets = [2, 1], sizes = [16, 16], strides = [1, 1]} : vector<18x18xf32> to vector<16x16xf32>
    %29 = vector.extract_strided_slice %11 {offsets = [2, 2], sizes = [16, 16], strides = [1, 1]} : vector<18x18xf32> to vector<16x16xf32>
    %30 = arith.subf %16, %25 : vector<16x16xf32>
    %31 = math.absf %30 : vector<16x16xf32>
    %32 = arith.mulf %31, %1 : vector<16x16xf32>
    %33 = vector.shape_cast %1 : vector<16x16xf32> to vector<1x16x16xf32>
    %cst_9 = arith.constant dense<0.000000e+00> : vector<1xf32>
    %34 = vector.multi_reduction <add>, %33, %cst_9 [1, 2] : vector<1x16x16xf32> to vector<1xf32>
    %35 = vector.shape_cast %34 : vector<1xf32> to vector<1x1x1xf32>
    %36 = vector.extract %35[0, 0, 0] : f32 from vector<1x1x1xf32>
    %37 = vector.shape_cast %32 : vector<16x16xf32> to vector<1x16x16xf32>
    %cst_10 = arith.constant dense<0xFF800000> : vector<1xf32>
    %38 = vector.multi_reduction <maximumf>, %37, %cst_10 [1, 2] : vector<1x16x16xf32> to vector<1xf32>
    %39 = vector.shape_cast %38 : vector<1xf32> to vector<1x1x1xf32>
    %40 = vector.extract %39[0, 0, 0] : f32 from vector<1x1x1xf32>
    %41 = arith.subf %12, %14 : vector<16x16xf32>
    %42 = arith.subf %15, %17 : vector<16x16xf32>
    %cst_11 = arith.constant 2.000000e+00 : f32
    %43 = vector.broadcast %cst_11 : f32 to vector<16x16xf32>
    %44 = arith.mulf %43, %42 : vector<16x16xf32>
    %45 = arith.addf %41, %44 : vector<16x16xf32>
    %46 = arith.addf %45, %18 : vector<16x16xf32>
    %47 = arith.subf %46, %20 : vector<16x16xf32>
    %cst_12 = arith.constant 1.250000e-01 : f32
    %48 = vector.broadcast %cst_12 : f32 to vector<16x16xf32>
    %49 = arith.mulf %47, %48 : vector<16x16xf32>
    %cst_13 = arith.constant 2.000000e+00 : f32
    %50 = vector.broadcast %cst_13 : f32 to vector<16x16xf32>
    %51 = arith.mulf %50, %13 : vector<16x16xf32>
    %52 = arith.addf %12, %51 : vector<16x16xf32>
    %53 = arith.addf %52, %14 : vector<16x16xf32>
    %54 = arith.subf %53, %18 : vector<16x16xf32>
    %cst_14 = arith.constant 2.000000e+00 : f32
    %55 = vector.broadcast %cst_14 : f32 to vector<16x16xf32>
    %56 = arith.mulf %55, %19 : vector<16x16xf32>
    %57 = arith.subf %54, %56 : vector<16x16xf32>
    %58 = arith.subf %57, %20 : vector<16x16xf32>
    %cst_15 = arith.constant 1.250000e-01 : f32
    %59 = vector.broadcast %cst_15 : f32 to vector<16x16xf32>
    %60 = arith.mulf %58, %59 : vector<16x16xf32>
    %61 = arith.subf %21, %23 : vector<16x16xf32>
    %62 = arith.subf %24, %26 : vector<16x16xf32>
    %cst_16 = arith.constant 2.000000e+00 : f32
    %63 = vector.broadcast %cst_16 : f32 to vector<16x16xf32>
    %64 = arith.mulf %63, %62 : vector<16x16xf32>
    %65 = arith.addf %61, %64 : vector<16x16xf32>
    %66 = arith.addf %65, %27 : vector<16x16xf32>
    %67 = arith.subf %66, %29 : vector<16x16xf32>
    %cst_17 = arith.constant 1.250000e-01 : f32
    %68 = vector.broadcast %cst_17 : f32 to vector<16x16xf32>
    %69 = arith.mulf %67, %68 : vector<16x16xf32>
    %cst_18 = arith.constant 2.000000e+00 : f32
    %70 = vector.broadcast %cst_18 : f32 to vector<16x16xf32>
    %71 = arith.mulf %70, %22 : vector<16x16xf32>
    %72 = arith.addf %21, %71 : vector<16x16xf32>
    %73 = arith.addf %72, %23 : vector<16x16xf32>
    %74 = arith.subf %73, %27 : vector<16x16xf32>
    %cst_19 = arith.constant 2.000000e+00 : f32
    %75 = vector.broadcast %cst_19 : f32 to vector<16x16xf32>
    %76 = arith.mulf %75, %28 : vector<16x16xf32>
    %77 = arith.subf %74, %76 : vector<16x16xf32>
    %78 = arith.subf %77, %29 : vector<16x16xf32>
    %cst_20 = arith.constant 1.250000e-01 : f32
    %79 = vector.broadcast %cst_20 : f32 to vector<16x16xf32>
    %80 = arith.mulf %78, %79 : vector<16x16xf32>
    %81 = arith.subf %49, %69 : vector<16x16xf32>
    %82 = arith.subf %60, %80 : vector<16x16xf32>
    %83 = arith.mulf %81, %81 : vector<16x16xf32>
    %84 = arith.mulf %82, %82 : vector<16x16xf32>
    %85 = arith.addf %83, %84 : vector<16x16xf32>
    %86 = arith.mulf %1, %85 : vector<16x16xf32>
    %87 = vector.shape_cast %86 : vector<16x16xf32> to vector<1x16x16xf32>
    %cst_21 = arith.constant dense<0.000000e+00> : vector<1xf32>
    %88 = vector.multi_reduction <add>, %87, %cst_21 [1, 2] : vector<1x16x16xf32> to vector<1xf32>
    %89 = vector.shape_cast %88 : vector<1xf32> to vector<1x1x1xf32>
    %90 = vector.extract %89[0, 0, 0] : f32 from vector<1x1x1xf32>
    %91 = arith.mulf %49, %49 : vector<16x16xf32>
    %92 = arith.mulf %60, %60 : vector<16x16xf32>
    %93 = arith.addf %91, %92 : vector<16x16xf32>
    %94 = arith.mulf %69, %69 : vector<16x16xf32>
    %95 = arith.mulf %80, %80 : vector<16x16xf32>
    %96 = arith.addf %94, %95 : vector<16x16xf32>
    %97 = arith.subf %93, %96 : vector<16x16xf32>
    %98 = math.absf %97 : vector<16x16xf32>
    %99 = arith.mulf %98, %1 : vector<16x16xf32>
    %cst_22 = arith.constant 0.111111112 : f32
    %100 = vector.broadcast %cst_22 : f32 to vector<16x16xf32>
    %101 = arith.cmpf olt, %99, %100 : vector<16x16xf32>
    %cst_23 = arith.constant 4.500000e+00 : f32
    %102 = vector.broadcast %cst_23 : f32 to vector<16x16xf32>
    %103 = arith.mulf %102, %99 : vector<16x16xf32>
    %104 = arith.mulf %103, %99 : vector<16x16xf32>
    %cst_24 = arith.constant 0.055555556 : f32
    %105 = vector.broadcast %cst_24 : f32 to vector<16x16xf32>
    %106 = arith.subf %99, %105 : vector<16x16xf32>
    %107 = arith.select %101, %104, %106 : vector<16x16xi1>, vector<16x16xf32>
    %108 = vector.shape_cast %107 : vector<16x16xf32> to vector<1x16x16xf32>
    %cst_25 = arith.constant dense<0.000000e+00> : vector<1xf32>
    %109 = vector.multi_reduction <add>, %108, %cst_25 [1, 2] : vector<1x16x16xf32> to vector<1xf32>
    %110 = vector.shape_cast %109 : vector<1xf32> to vector<1x1x1xf32>
    %111 = vector.extract %110[0, 0, 0] : f32 from vector<1x1x1xf32>
    %112 = tpu.iota {dimensions = array<i32: 0>} : vector<8x128xi32>
    %113 = tpu.iota {dimensions = array<i32: 1>} : vector<8x128xi32>
    %c0_i32 = arith.constant 0 : i32
    %114 = vector.broadcast %c0_i32 : i32 to vector<8x128xi32>
    %115 = arith.cmpi eq, %112, %114 : vector<8x128xi32>
    %cst_26 = arith.constant 0.000000e+00 : f32
    %116 = vector.broadcast %cst_26 : f32 to vector<8x128xf32>
    %c0_i32_27 = arith.constant 0 : i32
    %117 = vector.broadcast %c0_i32_27 : i32 to vector<8x128xi32>
    %118 = arith.cmpi eq, %113, %117 : vector<8x128xi32>
    %119 = arith.andi %115, %118 : vector<8x128xi1>
    %120 = vector.broadcast %36 : f32 to vector<8x128xf32>
    %121 = arith.select %119, %120, %116 : vector<8x128xi1>, vector<8x128xf32>
    %c1_i32 = arith.constant 1 : i32
    %122 = vector.broadcast %c1_i32 : i32 to vector<8x128xi32>
    %123 = arith.cmpi eq, %113, %122 : vector<8x128xi32>
    %124 = arith.andi %115, %123 : vector<8x128xi1>
    %125 = vector.broadcast %40 : f32 to vector<8x128xf32>
    %126 = arith.select %124, %125, %121 : vector<8x128xi1>, vector<8x128xf32>
    %c2_i32 = arith.constant 2 : i32
    %127 = vector.broadcast %c2_i32 : i32 to vector<8x128xi32>
    %128 = arith.cmpi eq, %113, %127 : vector<8x128xi32>
    %129 = arith.andi %115, %128 : vector<8x128xi1>
    %130 = vector.broadcast %90 : f32 to vector<8x128xf32>
    %131 = arith.select %129, %130, %126 : vector<8x128xi1>, vector<8x128xf32>
    %c3_i32 = arith.constant 3 : i32
    %132 = vector.broadcast %c3_i32 : i32 to vector<8x128xi32>
    %133 = arith.cmpi eq, %113, %132 : vector<8x128xi32>
    %134 = arith.andi %115, %133 : vector<8x128xi1>
    %135 = vector.broadcast %111 : f32 to vector<8x128xf32>
    %136 = arith.select %134, %135, %131 : vector<8x128xi1>, vector<8x128xf32>
    %137 = vector.shape_cast %136 : vector<8x128xf32> to vector<1x8x128xf32>
    %c0_28 = arith.constant 0 : index
    %c0_29 = arith.constant 0 : index
    %c0_30 = arith.constant 0 : index
    %138 = vector.load %arg4[%c0_28, %c0_29, %c0_30] : memref<1x8x128xf32, #tpu.memory_space<vmem>>, vector<1x8x128xf32>
    tpu.vector_store %arg4[%c0_28, %c0_29, %c0_30], %137 {strides = array<i32>} : memref<1x8x128xf32, #tpu.memory_space<vmem>>, vector<1x8x128xf32>,
    %139 = vector.shape_cast %32 : vector<16x16xf32> to vector<1x16x16xf32>
    %c0_31 = arith.constant 0 : index
    %c0_32 = arith.constant 0 : index
    %c0_33 = arith.constant 0 : index
    %140 = vector.load %arg5[%c0_31, %c0_32, %c0_33] : memref<1x16x16xf32, #tpu.memory_space<vmem>>, vector<1x16x16xf32>
    tpu.vector_store %arg5[%c0_31, %c0_32, %c0_33], %139 {strides = array<i32>} : memref<1x16x16xf32, #tpu.memory_space<vmem>>, vector<1x16x16xf32>,
    return
  }
  func.func @transform_0(%arg0: i32) -> (i32, i32, i32) {
    %c0_i32 = arith.constant 0 : i32
    %c0_i32_0 = arith.constant 0 : i32
    %c0_i32_1 = arith.constant 0 : i32
    return %arg0, %c0_i32, %c0_i32_0 : i32, i32, i32
  }
  func.func @transform_1(%arg0: i32) -> (i32, i32, i32) {
    %c0_i32 = arith.constant 0 : i32
    %c0_i32_0 = arith.constant 0 : i32
    %c0_i32_1 = arith.constant 0 : i32
    return %arg0, %c0_i32, %c0_i32_0 : i32, i32, i32
  }
  func.func @transform_2(%arg0: i32) -> (i32, i32, i32) {
    %c0_i32 = arith.constant 0 : i32
    %c0_i32_0 = arith.constant 0 : i32
    %c0_i32_1 = arith.constant 0 : i32
    return %arg0, %c0_i32, %c0_i32_0 : i32, i32, i32
  }
  func.func @transform_3(%arg0: i32) -> (i32, i32, i32) {
    %c0_i32 = arith.constant 0 : i32
    %c0_i32_0 = arith.constant 0 : i32
    %c0_i32_1 = arith.constant 0 : i32
    return %arg0, %c0_i32, %c0_i32_0 : i32, i32, i32
  }
  func.func @transform_4(%arg0: i32) -> (i32, i32, i32) {
    %c0_i32 = arith.constant 0 : i32
    %c0_i32_0 = arith.constant 0 : i32
    %c0_i32_1 = arith.constant 0 : i32
    return %arg0, %c0_i32, %c0_i32_0 : i32, i32, i32
  }
}

</mosaic_0001>

<bundles_post_ra>
// kernel: tpu_custom_call.1
= control target key start
LH: loop header
LB: loop body
LE: loop exit
PB: predicated region body
PF: predicated region fallthrough
CT: control target
= control target key end

     0   :  { %10 = vsyncpa [#allocation3], 0  ;;  %s1240_s0 = inlined_call_operand.vmem [shape: f32[2,18,18], index: 0, kind: input, shape index: {}]   ;;  %s1241_s1 = inlined_call_operand.vmem [shape: f32[2,18,18], index: 1, kind: input, shape index: {}]   ;;  %s1242_s2 = inlined_call_operand.vmem [shape: f32[2,16,16], index: 2, kind: input, shape index: {}]   ;;  %s1243_s3 = inlined_call_operand.hbm [shape: f32[2,8,128], index: 3, kind: output, shape index: {0}]   ;;  %s1244_s4 = inlined_call_operand.hbm [shape: f32[2,16,16], index: 4, kind: output, shape index: {1}]  }
   0x1   :  { %12 = vsyncpa [#allocation3 + $0x1], 0 }
   0x2   :  { %13 = vsyncpa [#allocation5], 0 }
   0x3   :  { %15 = vsyncpa [#allocation5 + $0x1], 0  ;;  %s969_s15 = smov 0   ;;  %s971_s16 = smov 0  }
   0x4   :  { %s973_s17 = smov 0   ;;  %s975_s18 = smov 0  }
   0x5 LB: > { %s990_s19 = sadd.s32 4294967295, %s935_s18   ;;  %s750_s20 = sadd.s32 4294967294, %s935_s18   ;;  %s935_s18 = sphi %s975_s18, %s1250_s18   ;;  %s931_s17 = sphi %s973_s17, %s1249_s17   ;;  %s927_s16 = sphi %s971_s16, %s1248_s16   ;;  %s923_s15 = sphi %s969_s15, %s1247_s15  }
   0x6   : > { %s994_s21 = sadd.s32 1, %s935_s18   ;;  %s106_s22 = sadd.s32 1, %s931_s17 }
   0x7   : > { %s103_s23 = ssub.s32 %s935_s18, %s994_s21  ;;  %p116_p0 = scmp.ne.s32.totalorder %s931_s17, %s927_s16 }
   0x8   : > { %p104_p1 = scmp.eq.s32.totalorder %s103_s23, 0  ;;  %p117_p2 = scmp.eq.s32.totalorder %s990_s19, 1 }
   0x9   : > { %p122_p3 = scmp.ne.s32.totalorder %s927_s16, %s923_s15  ;;  %p123_p4 = scmp.eq.s32.totalorder %s750_s20, 1 }
   0xa   : > { %s1005_s24 = scalar_select %p104_p1, %s931_s17, %s106_s22  }
   0xb   : > { %p1007_p5 = por %p117_p2, %p116_p0  ;;  %p1011_p6 = por %p123_p4, %p122_p3 }
   0xc   : > { %p753_p7 = scmp.ge.s32.totalorder %s935_s18, 1  ;;  %p191_p8 = scmp.lt.s32.totalorder %s935_s18, 3 }
   0xe   : > { %p192_p9 = pnand %p753_p7, %p191_p8 }
   0xf   : > { %p232_p10 = scmp.lt.s32.totalorder (!%p192_p9), %s990_s19, 1  ;;  %s937_s9 = smov (!%p192_p9), 126   ;;  %vm358_vm0 = vcmask (!%p192_p9), 1045504   ;;  %vm281_vm1 = vcmask (!%p192_p9), 1040384   ;;  %vm297_vm2 = vcmask (!%p192_p9), 130048   ;;  %vm348_vm3 = vcmask (!%p192_p9), 1046528  }
  0x10   : > { %195 = sbr.rel (%p192_p9) target bundleno = 445 (0x1bd), region = 32  ;;  %s938_s10 = smov (!%p192_p9), 127   ;;  %vm310_vm4 = vcmask (!%p192_p9), 138249   ;;  %vm312_vm5 = vcmask (!%p192_p9), 138248   ;;  %vm314_vm6 = vcmask (!%p192_p9), 131080   ;;  %vm595_vm9 = vcmask (!%p192_p9), 130049  }
  0x11   : > { %s939_s20 = smov (!%p192_p9), 1   ;;  %s1152_s22 = sand.u32 (!%p192_p9), 1, %s927_s16   ;;  %vm598_vm10 = vcmask (!%p192_p9), 122880  }
  0x12   : > { %s755_s23 = sshll.u32 (!%p192_p9), %s1152_s22, 4  ;;  %s770_s29 = sshll.u32 (!%p192_p9), %s990_s19, 8 }
  0x13   : > { %s1162_s6 = scalar_lea.hbm (!%p192_p9), %s1244_s4, %s770_s29  ;;  %s606_s7 = scalar_lea.sflag (!%p192_p9), [#allocation5], %s1152_s22 }
  0x17   : > { %s1019_s27 = scalar_select %p232_p10, %s990_s19, 1 }
  0x19   : > { %s771_s28 = smul.u32 24, %s1019_s27  ;;  %s769_s11 = sshll.u32 %s1019_s27, 4 }
  0x1a   : > { %s246_s14 = scalar_lea.vmem %s1242_s2, %s769_s11  ;;  %s231_s27 = scalar_lea.vmem [#allocation4], %s755_s23 }
  0x1b   : > { %s236_s5 = scalar_lea.vmem %s1240_s0, %s771_s28  ;;  %s241_s8 = scalar_lea.vmem %s1241_s1, %s771_s28  ;;  %v1088_v48 = vld [vmem:[%s246_s14] sm:$0xff]  ;;  %v1090_v49 = vld [vmem:[%s246_s14 + $0x8] sm:$0xff] }
  0x1c   : > { %v251_v0 = vld [vmem:[%s236_s5 + $0x10] sm:$0x3]  ;;  %v249_v1 = vld [vmem:[%s236_s5] sm:$0xff]  ;;  %v250_v2 = vld [vmem:[%s236_s5 + $0x8] sm:$0xff]  ;;  %v282_v51 = vrot.slane %v1088_v48, 7  ;;  %v283_v52 = vrot.slane %v1090_v49, 7 }
  0x1d   : > { %v254_v3 = vmax.f32 %v251_v0, 1e-07  ;;  %v252_v4 = vmax.f32 %v249_v1, 1e-07  ;;  %v253_v5 = vmax.f32 %v250_v2, 1e-07 }
  0x1e   : > { %v261_v6 = vld [vmem:[%s241_s8] sm:$0xff]  ;;  %v263_v7 = vld [vmem:[%s241_s8 + $0x10] sm:$0x3]  ;;  %v262_v8 = vld [vmem:[%s241_s8 + $0x8] sm:$0xff]  ;;  %v284_v54 = vsel %vm281_vm1, %v282_v51, %v283_v52  ;;  %v298_v55 = vsel %vm297_vm2, %v1088_v48, 0.0  ;;  %v299_v56 = vsel %vm297_vm2, %v1090_v49, 0.0 }
  0x1f   : > { %829 = vlog2.f32 %v254_v3  ;;  %v264_v9 = vmax.f32 %v261_v6, 1e-07  ;;  %v266_v10 = vmax.f32 %v263_v7, 1e-07  ;;  %v265_v11 = vmax.f32 %v262_v8, 1e-07 }
  0x20   : > { %831 = vlog2.f32 %v252_v4  ;;  %v300_v57 = vadd.f32 %v299_v56, %v298_v55  ;;  %s632_s28 = sshll.u32 %s231_s27, 4  ;;  %s1157_s28 = int_to_ptr.vmem [resolvable:$true] %s632_s28 }
  0x21   : > { %833 = vlog2.f32 %v264_v9  ;;  %s841_s8 = scalar_lea.vmem %s1157_s28, 256 }
  0x22   : > { %835 = vlog2.f32 %v253_v5  ;;  %p842_p11 = scmp.ne.s32.totalorder %s1157_s28, %s841_s8 }
  0x23   : > { %837 = vlog2.f32 %v266_v10 }
  0x24   : > { %839 = vlog2.f32 %v265_v11  ;;  %p843_p12 = pnand %p842_p11, %p1007_p5 }
  0x26   : > { %p844_p13 = pneg %p843_p12 }
  0x29   : > { %v830_v12 = vpop.eup %829 }
  0x2a   : > { %v832_v13 = vpop.eup %831  ;;  %v1028_v14 = vmul.f32 0.6931472, %v830_v12 }
  0x2b   : > { %v834_v15 = vpop.eup %833  ;;  %v1030_v16 = vmul.f32 0.6931472, %v832_v13 }
  0x2c   : > { %v836_v17 = vpop.eup %835  ;;  %338 = vrot.lane.b32.xlu1 %v1028_v14, %s937_s9  ;;  %v1034_v18 = vmul.f32 0.6931472, %v834_v15  ;;  %v362_v29 = vrot.slane %v1028_v14, 2  ;;  %v394_v30 = vmul.f32 2.0, %v1028_v14 }
  0x2d   : > { %v838_v19 = vpop.eup %837  ;;  %329 = vrot.lane.b32.xlu0 %v1030_v16, %s937_s9  ;;  %v1038_v20 = vmul.f32 0.6931472, %v836_v17  ;;  %v378_v25 = vmul.f32 2.0, %v1030_v16  ;;  %v359_v31 = vrot.slane %v1030_v16, 2 }
  0x2e   : > { %v840_v21 = vpop.eup %839  ;;  %v1042_v22 = vmul.f32 0.6931472, %v838_v19  ;;  %v462_v27 = vmul.f32 2.0, %v1034_v18  ;;  %v399_v34 = vrot.slane %v394_v30, 2  ;;  %v443_v47 = vrot.slane %v1034_v18, 2 }
  0x2f   : > { %v1046_v23 = vmul.f32 0.6931472, %v840_v21  ;;  %v379_v24 = vmul.f32 2.0, %v1038_v20  ;;  %v360_v28 = vrot.slane %v1038_v20, 2  ;;  %v396_v36 = vrot.slane %v378_v25, 2 }
  0x30   : > { %415 = vrot.lane.b32.xlu1 %v1034_v18, %s937_s9  ;;  %v478_v35 = vmul.f32 2.0, %v1042_v22  ;;  %v480_v41 = vrot.slane %v462_v27, 2  ;;  %v446_v45 = vrot.slane %v1042_v22, 2 }
  0x31   : > { %331 = vrot.lane.b32.xlu0 %v1038_v20, %s937_s9  ;;  %v463_v26 = vmul.f32 2.0, %v1046_v23  ;;  %v397_v32 = vrot.slane %v379_v24, 2  ;;  %v1065_v33 = vsel %vm358_vm0, %v360_v28, %v362_v29  ;;  %v1069_v37 = vsel %vm358_vm0, %v359_v31, %v360_v28 }
  0x32   : > { %v483_v40 = vrot.slane %v478_v35, 2  ;;  %v444_v44 = vrot.slane %v1046_v23, 2 }
  0x33   : > { %v481_v38 = vrot.slane %v463_v26, 2  ;;  %v400_v39 = vsel %vm358_vm0, %v397_v32, %v399_v34  ;;  %v398_v42 = vsel %vm358_vm0, %v396_v36, %v397_v32 }
  0x34   : > { %424 = vrot.lane.b32.xlu1 %v1042_v22, %s937_s9  ;;  %v1095_v50 = vsel %vm358_vm0, %v444_v44, %v446_v45  ;;  %v1100_v53 = vsel %vm358_vm0, %v443_v47, %v444_v44 }
  0x35   : > { %417 = vrot.lane.b32.xlu0 %v1046_v23, %s937_s9  ;;  %v484_v43 = vsel %vm358_vm0, %v481_v38, %v483_v40  ;;  %v482_v46 = vsel %vm358_vm0, %v480_v41, %v481_v38 }
  0x38   : > { %384 = vrot.lane.b32.xlu1 %v379_v24, %s938_s10 }
  0x39   : > { %382 = vrot.lane.b32.xlu0 %v378_v25, %s938_s10 }
  0x3c   : > { %468 = vrot.lane.b32.xlu1 %v463_v26, %s938_s10 }
  0x3d   : > { %466 = vrot.lane.b32.xlu0 %v462_v27, %s938_s10 }
  0x40   : > { %370 = vrot.lane.b32.xlu1 %v1065_v33, %s937_s9 }
  0x41   : > { %368 = vrot.lane.b32.xlu0 %v1069_v37, %s937_s9 }
  0x44   : > { %403 = vrot.lane.b32.xlu1 %v400_v39, %s938_s10 }
  0x45   : > { %401 = vrot.lane.b32.xlu0 %v398_v42, %s938_s10 }
  0x48   : > { %487 = vrot.lane.b32.xlu1 %v484_v43, %s938_s10 }
  0x49   : > { %485 = vrot.lane.b32.xlu0 %v482_v46, %s938_s10 }
  0x4c   : > { %454 = vrot.lane.b32.xlu1 %v1095_v50, %s937_s9 }
  0x4d   : > { %452 = vrot.lane.b32.xlu0 %v1100_v53, %s937_s9  ;;  %s940_s9 = smov [#allocation4]  }
  0x50   : > { %287 = vrot.lane.b32.xlu1 %v284_v54, %s939_s20 }
  0x51   : > { %285 = vrot.lane.b32.xlu0 %v282_v51, %s939_s20 }
  0x55   : > { %289 = vrot.lane.b32.xlu0 %v283_v52, %s939_s20 }
  0x74   : > { %301 = vadd.xlane.f32.xlu1 %v300_v57 }
  0x9e   : > { %v339_v58 = vpop.permute.xlu1 %338 }
  0x9f   : > { %v330_v59 = vpop.permute.xlu0 %329  ;;  %v341_v62 = vsub.f32 %v1028_v14, %v339_v58 }
  0xa0   : > { %v335_v0 = vsub.f32 %v1030_v16, %v330_v59 }
  0xa1   : > { %v344_v4 = vmul.f32 2.0, %v341_v62 }
  0xa2   : > { %v416_v60 = vpop.permute.xlu1 %415  ;;  %v342_v5 = vmul.f32 2.0, %v335_v0 }
  0xa3   : > { %v332_v61 = vpop.permute.xlu0 %331  ;;  %v352_v11 = vrot.slane %v344_v4, 1  ;;  %v421_v13 = vsub.f32 %v1034_v18, %v416_v60  ;;  %v274_v4 = vsub.f32 %v1038_v20, %v1046_v23 }
  0xa4   : > { %v336_v63 = vsub.f32 %v1038_v20, %v332_v61  ;;  %v349_v12 = vrot.slane %v342_v5, 1 }
  0xa5   : > { %v428_v28 = vmul.f32 2.0, %v421_v13 }
  0xa6   : > { %v343_v1 = vmul.f32 2.0, %v336_v63  ;;  %v425_v2 = vpop.permute.xlu1 %424 }
  0xa7   : > { %v418_v3 = vpop.permute.xlu0 %417  ;;  %v427_v7 = vsub.f32 %v1042_v22, %v425_v2  ;;  %v434_v41 = vrot.slane %v428_v28, 1 }
  0xa8   : > { %v350_v6 = vrot.slane %v343_v1, 1  ;;  %v422_v8 = vsub.f32 %v1046_v23, %v418_v3 }
  0xa9   : > { %v430_v19 = vmul.f32 2.0, %v427_v7 }
  0xaa   : > { %v385_v9 = vpop.permute.xlu1 %384  ;;  %v353_v17 = vsel %vm348_vm3, %v350_v6, %v352_v11  ;;  %v429_v21 = vmul.f32 2.0, %v422_v8  ;;  %v351_v27 = vsel %vm348_vm3, %v349_v12, %v350_v6 }
  0xab   : > { %v383_v10 = vpop.permute.xlu0 %382  ;;  %v389_v15 = vadd.f32 %v385_v9, %v1038_v20  ;;  %v357_v29 = vadd.f32 %v353_v17, %v336_v63  ;;  %v437_v31 = vrot.slane %v430_v19, 1  ;;  %v356_v36 = vadd.f32 %v351_v27, %v335_v0 }
  0xac   : > { %v388_v24 = vadd.f32 %v383_v10, %v1030_v16  ;;  %v435_v32 = vrot.slane %v429_v21, 1  ;;  %v273_v63 = vsub.f32 %v1030_v16, %v1034_v18  ;;  %v277_v19 = vand.u32 2147483647, %v274_v4 }
  0xad   : > { %v391_v30 = vadd.f32 %v389_v15, %v332_v61  ;;  %v367_v44 = vadd.f32 %v1065_v33, %v357_v29  ;;  %v366_v45 = vadd.f32 %v1069_v37, %v356_v36 }
  0xae   : > { %v469_v25 = vpop.permute.xlu1 %468  ;;  %v390_v34 = vadd.f32 %v388_v24, %v330_v59  ;;  %v438_v43 = vsel %vm348_vm3, %v435_v32, %v437_v31  ;;  %v436_v55 = vsel %vm348_vm3, %v434_v41, %v435_v32 }
  0xaf   : > { %v467_v26 = vpop.permute.xlu0 %466  ;;  %v473_v38 = vadd.f32 %v469_v25, %v1046_v23  ;;  %v393_v42 = vsub.f32 %v391_v30, %v1065_v33  ;;  %v442_v61 = vadd.f32 %v438_v43, %v422_v8  ;;  %v441_v1 = vadd.f32 %v436_v55, %v421_v13 }
  0xb0   : > { %v472_v40 = vadd.f32 %v467_v26, %v1034_v18  ;;  %v392_v47 = vsub.f32 %v390_v34, %v1069_v37  ;;  %v276_v18 = vand.u32 2147483647, %v273_v63 }
  0xb1   : > { %v475_v51 = vadd.f32 %v473_v38, %v418_v3  ;;  %v451_v16 = vadd.f32 %v1095_v50, %v442_v61  ;;  %v450_v15 = vadd.f32 %v1100_v53, %v441_v1 }
  0xb2   : > { %v371_v35 = vpop.permute.xlu1 %370  ;;  %v474_v56 = vadd.f32 %v472_v40, %v416_v60  ;;  %v275_v60 = vsub.f32 %v1028_v14, %v1042_v22 }
  0xb3   : > { %v369_v39 = vpop.permute.xlu0 %368  ;;  %v375_v57 = vsub.f32 %v367_v44, %v371_v35  ;;  %v477_v37 = vsub.f32 %v475_v51, %v1095_v50 }
  0xb4   : > { %v374_v58 = vsub.f32 %v366_v45, %v369_v39  ;;  %v476_v8 = vsub.f32 %v474_v56, %v1100_v53  ;;  %v278_v14 = vand.u32 2147483647, %v275_v60 }
  0xb5   : > { %v377_v5 = vmul.f32 0.125, %v375_v57 }
  0xb6   : > { %v404_v46 = vpop.permute.xlu1 %403  ;;  %v376_v6 = vmul.f32 0.125, %v374_v58 }
  0xb7   : > { %v408_v52 = vsub.f32 %v393_v42, %v404_v46  ;;  %v402_v54 = vpop.permute.xlu0 %401  ;;  %v522_v22 = vmul.f32 %v377_v5, %v377_v5 }
  0xb8   : > { %v407_v59 = vsub.f32 %v392_v47, %v402_v54  ;;  %v521_v21 = vmul.f32 %v376_v6, %v376_v6 }
  0xb9   : > { %v410_v62 = vsub.f32 %v408_v52, %v371_v35 }
  0xba   : > { %v409_v33 = vsub.f32 %v407_v59, %v369_v39  ;;  %v488_v0 = vpop.permute.xlu1 %487 }
  0xbb   : > { %v412_v2 = vmul.f32 0.125, %v410_v62  ;;  %v486_v3 = vpop.permute.xlu0 %485  ;;  %v492_v9 = vsub.f32 %v477_v37, %v488_v0 }
  0xbc   : > { %v411_v7 = vmul.f32 0.125, %v409_v33  ;;  %v491_v12 = vsub.f32 %v476_v8, %v486_v3 }
  0xbd   : > { %v524_v10 = vmul.f32 %v412_v2, %v412_v2 }
  0xbe   : > { %v523_v11 = vmul.f32 %v411_v7, %v411_v7  ;;  %v455_v13 = vpop.permute.xlu1 %454 }
  0xbf   : > { %v459_v17 = vsub.f32 %v451_v16, %v455_v13  ;;  %v494_v20 = vsub.f32 %v492_v9, %v455_v13  ;;  %v453_v23 = vpop.permute.xlu0 %452  ;;  %v526_v50 = vadd.f32 %v524_v10, %v522_v22 }
  0xc0   : > { %v458_v24 = vsub.f32 %v450_v15, %v453_v23  ;;  %v493_v25 = vsub.f32 %v491_v12, %v453_v23  ;;  %v525_v28 = vadd.f32 %v523_v11, %v521_v21 }
  0xc1   : > { %v461_v26 = vmul.f32 0.125, %v459_v17  ;;  %v496_v27 = vmul.f32 0.125, %v494_v20 }
  0xc2   : > { %v460_v29 = vmul.f32 0.125, %v458_v24  ;;  %v495_v30 = vmul.f32 0.125, %v493_v25  ;;  %v288_v36 = vpop.permute.xlu1 %287 }
  0xc3   : > { %v498_v31 = vsub.f32 %v377_v5, %v461_v26  ;;  %v500_v32 = vsub.f32 %v412_v2, %v496_v27  ;;  %v528_v53 = vmul.f32 %v461_v26, %v461_v26  ;;  %v530_v34 = vmul.f32 %v496_v27, %v496_v27  ;;  %v286_v35 = vpop.permute.xlu0 %285 }
  0xc4   : > { %v497_v38 = vsub.f32 %v376_v6, %v460_v29  ;;  %v499_v39 = vsub.f32 %v411_v7, %v495_v30  ;;  %v527_v40 = vmul.f32 %v460_v29, %v460_v29  ;;  %v529_v41 = vmul.f32 %v495_v30, %v495_v30 }
  0xc5   : > { %v502_v42 = vmul.f32 %v498_v31, %v498_v31  ;;  %v504_v43 = vmul.f32 %v500_v32, %v500_v32  ;;  %v532_v44 = vadd.f32 %v530_v34, %v528_v53  ;;  %v294_v45 = vmul.f32 %v286_v35, %v276_v18 }
  0xc6   : > { %v501_v46 = vmul.f32 %v497_v38, %v497_v38  ;;  %v503_v47 = vmul.f32 %v499_v39, %v499_v39  ;;  %v531_v51 = vadd.f32 %v529_v41, %v527_v40  ;;  %v295_v52 = vmul.f32 %v288_v36, %v277_v19 }
  0xc7   : > { %v534_v54 = vsub.f32 %v526_v50, %v532_v44  ;;  %v311_v55 = vsel %vm310_vm4, %v294_v45, -inf  ;;  %v290_v56 = vpop.permute.xlu0 %289  ;;  %v506_v57 = vadd.f32 %v504_v43, %v502_v42 }
  0xc8   : > { %v533_v58 = vsub.f32 %v525_v28, %v531_v51  ;;  %v313_v59 = vsel %vm312_vm5, %v295_v52, -inf  ;;  %v296_v61 = vmul.f32 %v290_v56, %v278_v14  ;;  %v505_v62 = vadd.f32 %v503_v47, %v501_v46 }
  0xc9   : > { %v536_v63 = vand.u32 2147483647, %v534_v54  ;;  %v316_v33 = vmax.f32 %v311_v55, %v313_v59  ;;  %v508_v0 = vmul.f32 %v506_v57, %v1090_v49 }
  0xca   : > { %v535_v1 = vand.u32 2147483647, %v533_v58  ;;  %v315_v2 = vsel %vm314_vm6, %v296_v61, -inf  ;;  %v507_v37 = vmul.f32 %v505_v62, %v1088_v48 }
  0xcb   : > { %v538_v3 = vmul.f32 %v536_v63, %v1090_v49  ;;  %v317_v4 = vmax.f32 %v316_v33, %v315_v2  ;;  %v510_v6 = vsel %vm297_vm2, %v508_v0, 0.0 }
  0xcc   : > { %v537_v60 = vmul.f32 %v535_v1, %v1088_v48  ;;  %v509_v5 = vsel %vm297_vm2, %v507_v37, 0.0 }
  0xcd   : > { %318 = vmax.xlane.f32.xlu0 %v317_v4  ;;  %v542_v7 = vmul.f32 4.5, %v538_v3  ;;  %v511_v9 = vadd.f32 %v510_v6, %v509_v5  ;;  %v761_v18 = vadd.f32 -0.055555556, %v538_v3  ;;  %vm540_vm7 = vcmp.lt.f32.partialorder %v538_v3, 0.11111111 }
  0xce   : > { %v541_v8 = vmul.f32 4.5, %v537_v60  ;;  %v760_v11 = vadd.f32 -0.055555556, %v537_v60  ;;  %vm539_vm8 = vcmp.lt.f32.partialorder %v537_v60, 0.11111111 }
  0xcf   : > { %v544_v16 = vmul.f32 %v542_v7, %v538_v3 }
  0xd0   : > { %v543_v10 = vmul.f32 %v541_v8, %v537_v60 }
  0xd1   : > { %512 = vadd.xlane.f32.xlu0 %v511_v9  ;;  %v548_v12 = vsel %vm540_vm7, %v544_v16, %v761_v18 }
  0xd2   : > { %v547_v49 = vsel %vm539_vm8, %v543_v10, %v760_v11  ;;  %v550_v13 = vsel %vm297_vm2, %v548_v12, 0.0 }
  0xd3   : > { %v549_v48 = vsel %vm297_vm2, %v547_v49, 0.0 }
  0xd4   : > { %v551_v15 = vadd.f32 %v550_v13, %v549_v48 }
  0xd6   : > { %552 = vadd.xlane.f32.xlu1 %v551_v15 }
  0xe7   : > { %588 = vrot.lane.b32.xlu1 %v295_v52, %s938_s10  ;;  %586 = vrot.lane.b32.xlu0 %v294_v45, %s938_s10 }
  0xeb   : > { %590 = vrot.lane.b32.xlu1 %v296_v61, %s938_s10  ;;  %s845_s10 = sshll.u32 %s940_s9, 4  ;;  %s846_s10 = int_to_ptr.vmem [resolvable:$false] %s845_s10 }
  0xec   : > { %s847_s11 = scalar_lea.vmem %s846_s10, 512  ;;  %p848_p0 = scmp.lt.s32.totalorder %s1157_s28, %s846_s10 }
  0xed   : > { %p849_p1 = scmp.lt.s32.totalorder %s847_s11, %s841_s8 }
  0xef   : > { %p850_p2 = por %p849_p1, %p848_p0 }
  0xf1   : > { %p851_p3 = pnand %p850_p2, %p844_p13 }
 0x101   : > { %v302_v17 = vpop.xlane.xlu1 %301 }
 0x102   : > { %v303_v20 = vrot.slane %v302_v17, 4 }
 0x104   : > { %v304_v23 = vadd.f32 %v303_v20, %v302_v17 }
 0x106   : > { %v305_v19 = vrot.slane %v304_v23, 2 }
 0x108   : > { %v306_v14 = vadd.f32 %v305_v19, %v304_v23 }
 0x10a   : > { %v307_v22 = vrot.slane %v306_v14, 1 }
 0x10c   : > { %v308_v21 = vadd.f32 %v307_v22, %v306_v14 }
 0x10e   : > { %772 = vpush %v308_v21 }
 0x15a   : > { %v319_v24 = vpop.xlane.xlu0 %318 }
 0x15b   : > { %v320_v25 = vrot.slane %v319_v24, 4 }
 0x15d   : > { %v321_v26 = vmax.f32 %v319_v24, %v320_v25 }
 0x15e   : > { %v513_v27 = vpop.xlane.xlu0 %512 }
 0x15f   : > { %v322_v50 = vrot.slane %v321_v26, 2  ;;  %v514_v28 = vrot.slane %v513_v27, 4 }
 0x161   : > { %v515_v29 = vadd.f32 %v514_v28, %v513_v27  ;;  %v323_v30 = vmax.f32 %v321_v26, %v322_v50 }
 0x162   : > { %v587_v31 = vpop.permute.xlu0 %586 }
 0x163   : > { %v516_v32 = vrot.slane %v515_v29, 2  ;;  %596 = vst.msk [vmem:[%s231_s27 - $0x1] sm:$0xfe] %vm595_vm9, %v587_v31  ;;  %v553_v53 = vpop.xlane.xlu1 %552  ;;  %v324_v34 = vrot.slane %v323_v30, 1 }
 0x164   : > { %v554_v35 = vrot.slane %v553_v53, 4 }
 0x165   : > { %v325_v36 = vmax.f32 %v323_v30, %v324_v34  ;;  %v517_v38 = vadd.f32 %v516_v32, %v515_v29 }
 0x166   : > { %v555_v39 = vadd.f32 %v554_v35, %v553_v53 }
 0x167   : > { %v589_v40 = vpop.permute.xlu1 %588  ;;  %774 = vpush %v325_v36  ;;  %v518_v41 = vrot.slane %v517_v38, 1 }
 0x168   : > { %v556_v42 = vrot.slane %v555_v39, 2  ;;  %597 = vst.msk [vmem:[%s231_s27 + $0x7] sm:$0xff] %vm297_vm2, %v589_v40 }
 0x169   : > { %v519_v43 = vadd.f32 %v518_v41, %v517_v38 }
 0x16a   : > { %v557_v44 = vadd.f32 %v556_v42, %v555_v39 }
 0x16b   : > { %v591_v45 = vpop.permute.xlu1 %590  ;;  %776 = vpush %v519_v43 }
 0x16c   : > { %599 = vst.msk [vmem:[%s231_s27 + $0xf] sm:$0x1] %vm598_vm10, %v591_v45  ;;  %v558_v46 = vrot.slane %v557_v44, 1 }
 0x16d   : > { %854 = shalt.err (!%p851_p3)
}
 0x16e   : > { %s855_s12 = scalar_lea.hbm %s1162_s6, 256  ;;  %s859_s20 = scalar_lea.hbm %s1244_s4, 512 }
 0x16f   : > { %p856_p4 = scmp.ne.s32.totalorder %s1162_s6, %s855_s12  ;;  %p860_p9 = scmp.lt.u32.totalorder %s1162_s6, %s1244_s4 }
 0x170   : > { %p861_p10 = scmp.lt.u32.totalorder %s859_s20, %s855_s12  ;;  %p863_p12 = scmp.lt.u32.totalorder %s855_s12, %s1162_s6 }
 0x171   : > { %p857_p7 = pnand %p856_p4, %p1007_p5 }
 0x172   : > { %p862_p11 = por %p861_p10, %p860_p9 }
 0x173   : > { %p858_p8 = pneg %p857_p7 }
 0x174   : > { %p864_p13 = por %p863_p12, %p862_p11 }
 0x176   : > { %p865_p0 = pnand %p864_p13, %p858_p8 }
 0x178   : > { %868 = shalt.err (!%p865_p0)
}
 0x179   : > { %s941_s29 = smov 128   ;;  %s942_s30 = smov 8   ;;  %v559_v47 = vadd.f32 %v558_v46, %v557_v44  ;;  %v561_v51 = vlaneseq }
 0x17a   : > { %781 = dma.vmem_to_hbm [thread:$0]  (%p1007_p5), %s1157_s28, 256, %s1162_s6, %s606_s7, %s941_s29, %s941_s29, %s942_s30  }
 0x17b   : > { %778 = vpush %v559_v47  ;;  %v562_v52 = vshrl.u32 %v561_v51, 7  ;;  %v564_v54 = vand.u32 127, %v561_v51  ;;  %s773_s5 = spop %772  ;;  %s754_s8 = sshll.u32 %s1152_s22, 3 }
 0x17c   : > { %v568_v55 = vstv %s773_s5  ;;  %s764_s28 = sshll.u32 %s990_s19, 7  ;;  %s224_s6 = scalar_lea.vmem [#allocation2], %s754_s8 }
 0x17d   : > { %vm565_vm11 = vcmp.eq.s32.totalorder %v562_v52, 0  ;;  %vm566_vm12 = vcmp.eq.s32.totalorder %v564_v54, 0  ;;  %vm570_vm14 = vcmp.eq.s32.totalorder %v564_v54, 1  ;;  %vm574_vm15 = vcmp.eq.s32.totalorder %v564_v54, 2  ;;  %s619_s7 = sshll.u32 %s224_s6, 4  ;;  %s1197_s14 = scalar_lea.hbm %s1243_s3, %s764_s28  ;;  %s1199_s7 = int_to_ptr.vmem [resolvable:$true] %s619_s7 }
 0x17e   : > { %vm567_vm13 = vmand %vm565_vm11, %vm566_vm12  ;;  %vm578_vm0 = vcmp.eq.s32.totalorder %v564_v54, 3  ;;  %s601_s19 = scalar_lea.sflag [#allocation3], %s1152_s22  ;;  %s869_s20 = scalar_lea.vmem %s1199_s7, 128 }
 0x17f   : > { %v569_v56 = vsel %vm567_vm13, %v568_v55, 0.0  ;;  %vm571_vm1 = vmand %vm565_vm11, %vm570_vm14  ;;  %p870_p1 = scmp.ne.s32.totalorder %s1199_s7, %s869_s20  ;;  %s943_s23 = smov [#allocation2]  }
 0x180   : > { %vm575_vm2 = vmand %vm565_vm11, %vm574_vm15  ;;  %s873_s27 = sshll.u32 %s943_s23, 4  ;;  %s874_s27 = int_to_ptr.vmem [resolvable:$false] %s873_s27 }
 0x181   : > { %vm579_vm3 = vmand %vm565_vm11, %vm578_vm0  ;;  %p871_p2 = pnand %p870_p1, %p1007_p5  ;;  %s875_s29 = scalar_lea.vmem %s874_s27, 256 }
 0x182   : > { %p876_p4 = scmp.lt.s32.totalorder %s1199_s7, %s874_s27  ;;  %p877_p7 = scmp.lt.s32.totalorder %s875_s29, %s869_s20 }
 0x183   : > { %p872_p3 = pneg %p871_p2 }
 0x184   : > { %p878_p8 = por %p877_p7, %p876_p4 }
 0x186   : > { %p879_p9 = pnand %p878_p8, %p872_p3 }
 0x198   : > { %s775_s9 = spop %774 }
 0x199   : > { %v572_v57 = vstv %s775_s9 }
 0x19a   : > { %v573_v59 = vsel %vm571_vm1, %v572_v57, %v569_v56 }
 0x19c   : > { %s777_s10 = spop %776 }
 0x19d   : > { %v576_v58 = vstv %s777_s10 }
 0x19e   : > { %v577_v61 = vsel %vm575_vm2, %v576_v58, %v573_v59 }
 0x1ac   : > { %s779_s11 = spop %778 }
 0x1ad   : > { %v580_v62 = vstv %s779_s11 }
 0x1ae   : > { %v581_v63 = vsel %vm579_vm3, %v580_v62, %v577_v61 }
 0x1af   : > { %582 = vst [vmem:[%s224_s6] sm:$0xff] %v581_v63 }
 0x1b0   : > { %882 = shalt.err (!%p879_p9)
}
 0x1b1   : > { %s883_s22 = scalar_lea.hbm %s1197_s14, 128  ;;  %s887_s8 = scalar_lea.hbm %s1243_s3, 256 }
 0x1b2   : > { %p884_p10 = scmp.ne.s32.totalorder %s1197_s14, %s883_s22  ;;  %p888_p13 = scmp.lt.u32.totalorder %s1197_s14, %s1243_s3 }
 0x1b3   : > { %p889_p0 = scmp.lt.u32.totalorder %s887_s8, %s883_s22  ;;  %p891_p2 = scmp.lt.u32.totalorder %s883_s22, %s1197_s14 }
 0x1b4   : > { %p885_p11 = pnand %p884_p10, %p1007_p5 }
 0x1b5   : > { %p890_p1 = por %p889_p0, %p888_p13 }
 0x1b6   : > { %p886_p12 = pneg %p885_p11 }
 0x1b7   : > { %p892_p3 = por %p891_p2, %p890_p1 }
 0x1b9   : > { %p893_p4 = pnand %p892_p3, %p886_p12 }
 0x1bb   : > { %896 = shalt.err (!%p893_p4)
}
 0x1bc   : > { %780 = dma.vmem_to_hbm [thread:$0]  (%p1007_p5), %s1199_s7, 128, %s1197_s14, %s601_s19  }
 0x1bd PF: > { %p791_p7 = scmp.ge.s32.totalorder %s935_s18, 2  ;;  %s647_s28 = sand.u32 1, %s923_s15  }
 0x1be   : > { %s648_s6 = scalar_lea.sflag [#allocation3], %s647_s28 }
 0x1bf   : > { %p785_p8 = pnand %p791_p7, %p1011_p6 }
 0x1c1   : > { %914 = dma.done.wait (!%p785_p8), %s648_s6, 128  }
 0x1c2   : > { %916 = vsyncadd (!%p785_p8), %s648_s6, 4294967168  ;;  %s657_s11 = scalar_lea.sflag [#allocation5], %s647_s28 }
 0x1c3   : > { %918 = dma.done.wait (!%p785_p8), %s657_s11, 256  }
 0x1c4   : > { %920 = vsyncadd (!%p785_p8), %s657_s11, 4294967040  ;;  %p18_p5 = scmp.ge.s32.totalorder %s994_s21, 4   ;;  %s1247_s15 = smov %s927_s16 }
 0x1c5   : > { %s1248_s16 = smov %s931_s17  ;;  %s1249_s17 = smov %s1005_s24 }
 0x1c6   : > { %s1250_s18 = smov %s994_s21  ;;  %20 = sbr.rel (!%p18_p5) target bundleno = 5 (0x5), region = 90 }
 0x1cd   :  { %662 = vsyncpa [#allocation3], 1 }
 0x1ce   :  { %664 = vsyncpa [#allocation3 + $0x1], 1 }
 0x1cf   :  { %665 = vsyncpa [#allocation5], 1 }
 0x1d0   :  { %667 = vsyncpa [#allocation5 + $0x1], 1 }

</bundles_post_ra>
